<compile_context>
chip_gen: v6e
topology: v6e:2x2x1
jax: 0.10.0
libtpu: 0.0.40
codegen_flags: <defaults>
</compile_context>

<pallas_src>
import functools

import jax
import jax.numpy as jnp
from jax import lax
from jax.experimental import pallas as pl
from jax.experimental.pallas import tpu as pltpu


def _rup(x, m):
    return ((x + m - 1) // m) * m


# ----------------------------- Pallas kernel ---------------------------------
def _make_kernel(num_dense_layers, hp, lp, compute_dtype, unroll):
    """One kernel invocation == the whole T-step rollout (T from ref shapes)."""

    def kernel(xs_ref, as_ref, h0_ref,
               wgxx_ref, wgxa_ref, bgx_ref, wgh_ref, bgh_ref,
               wd_ref, bd_ref, wh_ref, bh_ref,
               out_ref, hout_ref,
               gx_ref, hs_ref):
        t_steps, bp, lxp = xs_ref.shape
        ap = as_ref.shape[-1]

        # ---- phase 1: input-path gate matmul, batched over all timesteps ----
        # Gate columns [ r | z | i_n ], each hp wide.  Bias carries
        # b_ih_r + b_hh_r, b_ih_z + b_hh_z and b_ih_n.
        x_flat = xs_ref[...].reshape(t_steps * bp, lxp)
        a_flat = as_ref[...].reshape(t_steps * bp, ap)
        gx = (jnp.dot(x_flat.astype(compute_dtype), wgxx_ref[...],
                      preferred_element_type=jnp.float32)
              + jnp.dot(a_flat.astype(compute_dtype), wgxa_ref[...],
                        preferred_element_type=jnp.float32)
              + bgx_ref[...])                               # (T*Bp, 3*Hp) f32
        gx_ref[...] = gx.reshape(t_steps, bp, 3 * hp)

        # ---- phase 2: serial GRU recurrence (only h·Wgh on the crit path) ----
        # Hidden-path gate columns [ r | z | h_n ]; bgh = [0 | 0 | b_hh_n] so
        # the n gate keeps b_hh_n inside r*(...), matching PyTorch GRUCell.
        bgh_b = jnp.broadcast_to(bgh_ref[...], (bp, 3 * hp))   # hoisted once

        def step(t, h):
            gh = jnp.dot(h.astype(compute_dtype), wgh_ref[...],
                         preferred_element_type=jnp.float32) + bgh_b
            gxt = gx_ref[t]                                   # (Bp, 3*Hp) f32
            r = jax.nn.sigmoid(gxt[:, 0 * hp:1 * hp] + gh[:, 0 * hp:1 * hp])
            z = jax.nn.sigmoid(gxt[:, 1 * hp:2 * hp] + gh[:, 1 * hp:2 * hp])
            n = jnp.tanh(gxt[:, 2 * hp:3 * hp] + r * gh[:, 2 * hp:3 * hp])
            h_new = (1.0 - z) * n + z * h        # f32 elementwise (v5e-safe)
            hs_ref[t] = h_new
            return h_new

        h_final = lax.fori_loop(0, t_steps, step, h0_ref[...], unroll=unroll)
        hout_ref[...] = h_final

        # ---- phase 3: Dense MLP + fused mu/logvar head, batched over T*Bp ----
        y = hs_ref[...].reshape(t_steps * bp, hp)
        for l in range(num_dense_layers):         # static unrolled layer loop
            y = jnp.maximum(
                jnp.dot(y.astype(compute_dtype), wd_ref[l],
                        preferred_element_type=jnp.float32) + bd_ref[l],
                0.0)
        out = (jnp.dot(y.astype(compute_dtype), wh_ref[...],
                       preferred_element_type=jnp.float32)
               + bh_ref[...])                              # (T*Bp, 2*Lp) f32
        out_ref[...] = out.reshape(t_steps, bp, 2 * lp)    # lane-dense store

    return kernel


# ----------------------- one-time weight preparation --------------------------
def prepare_params(params, latent_dim, action_dim, hidden_dim, layers,
                   compute_dtype=jnp.bfloat16):
    """Transpose / pad / fuse PyTorch-layout weights. Run ONCE at init."""
    H = hidden_dim
    Hp = _rup(H, 128)
    Lp = _rup(latent_dim, 128)     # latent pad (input x AND mu/logvar heads)
    Ap = _rup(action_dim, 128)

    w_ih = params["w_ih"]           # (3H, latent+action)   rows: [r | z | n]
    w_hh = params["w_hh"]           # (3H, H)
    b_ih = params["b_ih"]           # (3H,)
    b_hh = params["b_hh"]           # (3H,)

    # Input-path gate weights split into latent / action blocks.
    # Column groups (each Hp wide): [ r | z | i_n ].
    wgxx = jnp.zeros((Lp, 3 * Hp), jnp.float32)
    wgxa = jnp.zeros((Ap, 3 * Hp), jnp.float32)
    bgx = jnp.zeros((1, 3 * Hp), jnp.float32)
    for g in range(3):
        wg = w_ih[g * H:(g + 1) * H, :]                       # (H, K)
        wgxx = wgxx.at[:latent_dim, g * Hp:g * Hp + H].set(wg[:, :latent_dim].T)
        wgxa = wgxa.at[:action_dim, g * Hp:g * Hp + H].set(wg[:, latent_dim:].T)
    bgx = bgx.at[0, 0 * Hp:0 * Hp + H].set(b_ih[0 * H:1 * H] + b_hh[0 * H:1 * H])
    bgx = bgx.at[0, 1 * Hp:1 * Hp + H].set(b_ih[1 * H:2 * H] + b_hh[1 * H:2 * H])
    bgx = bgx.at[0, 2 * Hp:2 * Hp + H].set(b_ih[2 * H:3 * H])         # b_ih_n

    # Hidden-path gate weights, column groups [ r | z | h_n ]; b_hh_n gets its
    # own bias slot so it stays inside r*(...).
    wgh = jnp.zeros((Hp, 3 * Hp), jnp.float32)
    bgh = jnp.zeros((1, 3 * Hp), jnp.float32)
    for g in range(3):
        wgh = wgh.at[:H, g * Hp:g * Hp + H].set(w_hh[g * H:(g + 1) * H, :].T)
    bgh = bgh.at[0, 2 * Hp:2 * Hp + H].set(b_hh[2 * H:3 * H])         # b_hh_n

    # Dense stack (pre-transposed to (in, out)), padded; biases as 2-D rows.
    wd = jnp.zeros((layers, Hp, Hp), jnp.float32)
    bd = jnp.zeros((layers, 1, Hp), jnp.float32)
    wd = wd.at[:, :H, :H].set(jnp.transpose(params["w_dense"], (0, 2, 1)))
    bd = bd.at[:, 0, :H].set(params["b_dense"])

    # Fused mu/logvar head: columns [ mu (Lp slot) | logvar (Lp slot) ].
    wh = jnp.zeros((Hp, 2 * Lp), jnp.float32)
    bh = jnp.zeros((1, 2 * Lp), jnp.float32)
    wh = wh.at[:H, :latent_dim].set(params["w_mu"].T)
    wh = wh.at[:H, Lp:Lp + latent_dim].set(params["w_logvar"].T)
    bh = bh.at[0, :latent_dim].set(params["b_mu"])
    bh = bh.at[0, Lp:Lp + latent_dim].set(params["b_logvar"])

    return {
        # MXU operands in compute_dtype (bf16 by default); biases stay f32.
        "wgxx": wgxx.astype(compute_dtype),
        "wgxa": wgxa.astype(compute_dtype),
        "bgx": bgx,
        "wgh": wgh.astype(compute_dtype),
        "bgh": bgh,
        "wd": wd.astype(compute_dtype),
        "bd": bd,
        "wh": wh.astype(compute_dtype),
        "bh": bh,
        "dims": (latent_dim, action_dim, hidden_dim, layers, Hp, Lp, Ap),
        "compute_dtype": compute_dtype,
    }


# ------------------------------- call wrapper ---------------------------------
def make_rollout_fn(prepped):
    """Returns fn(xs, a_s, h0) -> ((mu_seq, logvar_seq), h_T).

    xs: (T, B, latent), a_s: (T, B, action), h0: (B, hidden).
    The module's single-step forward(x, a, h) is just T == 1.
    """
    latent_dim, action_dim, H, layers, Hp, Lp, Ap = prepped["dims"]
    cdt = prepped["compute_dtype"]
    weights = (prepped["wgxx"], prepped["wgxa"], prepped["bgx"],
               prepped["wgh"], prepped["bgh"],
               prepped["wd"], prepped["bd"], prepped["wh"], prepped["bh"])

    def _rollout(wgxx, wgxa, bgx, wgh, bgh, wd, bd, wh, bh, xs, a_s, h0):
        T, B = xs.shape[0], xs.shape[1]
        Bp = _rup(max(B, 8), 8)

        # Only cheap activation padding happens per call (weights are prepped,
        # no concatenate -> no fusion barrier in front of the kernel).
        xs_pad = jnp.pad(xs, ((0, 0), (0, Bp - B), (0, Lp - latent_dim)))
        as_pad = jnp.pad(a_s, ((0, 0), (0, Bp - B), (0, Ap - action_dim)))
        h0_pad = jnp.pad(h0, ((0, Bp - B), (0, Hp - H)))

        unroll = True if T <= 16 else 4
        kernel = _make_kernel(layers, Hp, Lp, cdt, unroll)

        out_shapes = (
            jax.ShapeDtypeStruct((T, Bp, 2 * Lp), jnp.float32),   # mu|logvar
            jax.ShapeDtypeStruct((Bp, Hp), jnp.float32),          # final h
        )
        in_specs = [
            pl.BlockSpec((T, Bp, Lp), lambda i: (0, 0, 0)),        # xs
            pl.BlockSpec((T, Bp, Ap), lambda i: (0, 0, 0)),        # a_s
            pl.BlockSpec((Bp, Hp), lambda i: (0, 0)),              # h0
            pl.BlockSpec((Lp, 3 * Hp), lambda i: (0, 0)),          # wgxx
            pl.BlockSpec((Ap, 3 * Hp), lambda i: (0, 0)),          # wgxa
            pl.BlockSpec((1, 3 * Hp), lambda i: (0, 0)),           # bgx
            pl.BlockSpec((Hp, 3 * Hp), lambda i: (0, 0)),          # wgh
            pl.BlockSpec((1, 3 * Hp), lambda i: (0, 0)),           # bgh
            pl.BlockSpec((layers, Hp, Hp), lambda i: (0, 0, 0)),   # wd
            pl.BlockSpec((layers, 1, Hp), lambda i: (0, 0, 0)),    # bd
            pl.BlockSpec((Hp, 2 * Lp), lambda i: (0, 0)),          # wh
            pl.BlockSpec((1, 2 * Lp), lambda i: (0, 0)),           # bh
        ]
        out_specs = (
            pl.BlockSpec((T, Bp, 2 * Lp), lambda i: (0, 0, 0)),
            pl.BlockSpec((Bp, Hp), lambda i: (0, 0)),
        )
        out_seq, h_out = pl.pallas_call(
            kernel,
            out_shape=out_shapes,
            grid=(1,),
            in_specs=in_specs,
            out_specs=out_specs,
            scratch_shapes=[
                pltpu.VMEM((T, Bp, 3 * Hp), jnp.float32),   # gx (all steps)
                pltpu.VMEM((T, Bp, Hp), jnp.float32),       # h history
            ],
            compiler_params=pltpu.CompilerParams(
                dimension_semantics=("arbitrary",),
                vmem_limit_bytes=32 * 1024 * 1024),
        )(xs_pad, as_pad, h0_pad, wgxx, wgxa, bgx, wgh, bgh, wd, bd, wh, bh)

        mu = out_seq[:, :B, :latent_dim]
        logvar = out_seq[:, :B, Lp:Lp + latent_dim]
        h_new = h_out[:B, :H]          # never feed padded rows/cols back
        return (mu, logvar), h_new

    rolled = jax.jit(_rollout)

    def fn(xs, a_s, h0):
        return rolled(*weights, xs, a_s, h0)

    return fn


# ------------------------- pure-JAX reference (check) -------------------------
def _reference_step(x, a, h, params, layers):
    dot = functools.partial(jnp.dot, precision=jax.lax.Precision.HIGHEST)
    xa = jnp.concatenate([x, a], axis=-1)
    H = h.shape[-1]
    gi = dot(xa, params["w_ih"].T) + params["b_ih"]
    gh = dot(h, params["w_hh"].T) + params["b_hh"]
    r = jax.nn.sigmoid(gi[:, :H] + gh[:, :H])
    z = jax.nn.sigmoid(gi[:, H:2 * H] + gh[:, H:2 * H])
    n = jnp.tanh(gi[:, 2 * H:] + r * gh[:, 2 * H:])
    h_new = (1.0 - z) * n + z * h
    y = h_new
    for l in range(layers):
        y = jax.nn.relu(dot(y, params["w_dense"][l].T) + params["b_dense"][l])
    mu = dot(y, params["w_mu"].T) + params["b_mu"]
    logvar = dot(y, params["w_logvar"].T) + params["b_logvar"]
    return (mu, logvar), h_new


def _reference_rollout(xs, a_s, h0, params, layers):
    h = h0
    mus, lvs = [], []
    for t in range(xs.shape[0]):
        (mu, lv), h = _reference_step(xs[t], a_s[t], h, params, layers)
        mus.append(mu)
        lvs.append(lv)
    return (jnp.stack(mus), jnp.stack(lvs)), h


# ---------------------------------- main ---------------------------------------
if __name__ == "__main__":
    B = 2
    LATENT_DIM = 16
    ACTION_DIM = 8
    HIDDEN_DIM = 32
    LAYERS = 2
    T = 8
    INPUT_SIZE = LATENT_DIM + ACTION_DIM

    key = jax.random.PRNGKey(0)
    ks = jax.random.split(key, 16)

    def init(k, shape, scale=0.1):
        return (scale * jax.random.normal(k, shape)).astype(jnp.float32)

    params = {
        # GRUCell: weight_ih (3H, input), weight_hh (3H, H), biases (3H,)
        "w_ih": init(ks[0], (3 * HIDDEN_DIM, INPUT_SIZE)),
        "w_hh": init(ks[1], (3 * HIDDEN_DIM, HIDDEN_DIM)),
        "b_ih": init(ks[2], (3 * HIDDEN_DIM,)),
        "b_hh": init(ks[3], (3 * HIDDEN_DIM,)),
        # Dense: `layers` x Linear(H, H)
        "w_dense": init(ks[4], (LAYERS, HIDDEN_DIM, HIDDEN_DIM)),
        "b_dense": init(ks[5], (LAYERS, HIDDEN_DIM)),
        # output heads
        "w_mu": init(ks[6], (LATENT_DIM, HIDDEN_DIM)),
        "b_mu": init(ks[7], (LATENT_DIM,)),
        "w_logvar": init(ks[8], (LATENT_DIM, HIDDEN_DIM)),
        "b_logvar": init(ks[9], (LATENT_DIM,)),
    }

    x = init(ks[10], (B, LATENT_DIM), scale=1.0)
    a = init(ks[11], (B, ACTION_DIM), scale=1.0)
    h = init(ks[12], (B, HIDDEN_DIM), scale=1.0)
    xs = init(ks[13], (T, B, LATENT_DIM), scale=1.0)
    a_s = init(ks[14], (T, B, ACTION_DIM), scale=1.0)

    # References.
    (mu_r, lv_r), h1_r = _reference_step(x, a, h, params, LAYERS)
    (mus_r, lvs_r), hT_r = _reference_rollout(xs, a_s, h, params, LAYERS)

    # --- f32 MXU-operand path (tight tolerance) ------------------------------
    prepped_f32 = prepare_params(params, LATENT_DIM, ACTION_DIM, HIDDEN_DIM,
                                 LAYERS, compute_dtype=jnp.float32)
    rollout_f32 = make_rollout_fn(prepped_f32)

    # Single-step forward (module semantics) == rollout with T = 1.
    (mu_seq, lv_seq), h1 = rollout_f32(x[None], a[None], h)
    mu, lv = mu_seq[0], lv_seq[0]
    jax.block_until_ready((mu, lv, h1))
    assert jnp.allclose(mu, mu_r, atol=1e-4), "mu mismatch (single step)"
    assert jnp.allclose(lv, lv_r, atol=1e-4), "logvar mismatch (single step)"
    assert jnp.allclose(h1, h1_r, atol=1e-4), "h mismatch (single step)"

    # Fused T-step rollout in one pallas_call (single kernel invocation).
    (mus, lvs), hT = rollout_f32(xs, a_s, h)
    jax.block_until_ready((mus, lvs, hT))
    assert jnp.allclose(mus, mus_r, atol=1e-4), "mu mismatch (rollout)"
    assert jnp.allclose(lvs, lvs_r, atol=1e-4), "logvar mismatch (rollout)"
    assert jnp.allclose(hT, hT_r, atol=1e-4), "h mismatch (rollout)"

    # --- bf16 MXU-operand path (default; f32 accumulate + f32 elementwise) ----
    prepped_bf16 = prepare_params(params, LATENT_DIM, ACTION_DIM, HIDDEN_DIM,
                                  LAYERS)               # bf16 is the default
    rollout_bf16 = make_rollout_fn(prepped_bf16)
    (mus_b, lvs_b), hT_b = rollout_bf16(xs, a_s, h)
    jax.block_until_ready((mus_b, lvs_b, hT_b))
    assert jnp.allclose(mus_b, mus_r, atol=5e-2, rtol=5e-2), "mu mismatch (bf16)"
    assert jnp.allclose(lvs_b, lvs_r, atol=5e-2, rtol=5e-2), "logvar mismatch (bf16)"
    assert jnp.allclose(hT_b, hT_r, atol=5e-2, rtol=5e-2), "h mismatch (bf16)"

    print("KERNEL_OK")
</pallas_src>

<mosaic_0001>
module attributes {stable_mosaic.version = 11 : i64} {
  func.func @kernel(%arg0: i32, %arg1: memref<1x8x128xf32, #tpu.memory_space<vmem>>, %arg2: memref<1x8x128xf32, #tpu.memory_space<vmem>>, %arg3: memref<8x128xf32, #tpu.memory_space<vmem>>, %arg4: memref<128x384xf32, #tpu.memory_space<vmem>>, %arg5: memref<128x384xf32, #tpu.memory_space<vmem>>, %arg6: memref<1x384xf32, #tpu.memory_space<vmem>>, %arg7: memref<128x384xf32, #tpu.memory_space<vmem>>, %arg8: memref<1x384xf32, #tpu.memory_space<vmem>>, %arg9: memref<2x128x128xf32, #tpu.memory_space<vmem>>, %arg10: memref<2x1x128xf32, #tpu.memory_space<vmem>>, %arg11: memref<128x256xf32, #tpu.memory_space<vmem>>, %arg12: memref<1x256xf32, #tpu.memory_space<vmem>>, %arg13: memref<1x8x256xf32, #tpu.memory_space<vmem>>, %arg14: memref<8x128xf32, #tpu.memory_space<vmem>>, %arg15: memref<1x8x384xf32, #tpu.memory_space<vmem>>, %arg16: memref<1x8x128xf32, #tpu.memory_space<vmem>>) attributes {dimension_semantics = [#tpu.dimension_semantics<arbitrary>], iteration_bounds = array<i64: 1>, scalar_prefetch = 0 : i64, scratch_operands = 2 : i64, tpu.core_type = #tpu.core_type<tc>, window_params = [{pipeline_mode = #tpu.pipeline_mode<synchronous>, transform_indices = @transform_0, window_bounds = array<i64: 1, 8, 128>}, {pipeline_mode = #tpu.pipeline_mode<synchronous>, transform_indices = @transform_1, window_bounds = array<i64: 1, 8, 128>}, {pipeline_mode = #tpu.pipeline_mode<synchronous>, transform_indices = @transform_2, window_bounds = array<i64: 8, 128>}, {pipeline_mode = #tpu.pipeline_mode<synchronous>, transform_indices = @transform_3, window_bounds = array<i64: 128, 384>}, {pipeline_mode = #tpu.pipeline_mode<synchronous>, transform_indices = @transform_4, window_bounds = array<i64: 128, 384>}, {pipeline_mode = #tpu.pipeline_mode<synchronous>, transform_indices = @transform_5, window_bounds = array<i64: 1, 384>}, {pipeline_mode = #tpu.pipeline_mode<synchronous>, transform_indices = @transform_6, window_bounds = array<i64: 128, 384>}, {pipeline_mode = #tpu.pipeline_mode<synchronous>, transform_indices = @transform_7, window_bounds = array<i64: 1, 384>}, {pipeline_mode = #tpu.pipeline_mode<synchronous>, transform_indices = @transform_8, window_bounds = array<i64: 2, 128, 128>}, {pipeline_mode = #tpu.pipeline_mode<synchronous>, transform_indices = @transform_9, window_bounds = array<i64: 2, 1, 128>}, {pipeline_mode = #tpu.pipeline_mode<synchronous>, transform_indices = @transform_10, window_bounds = array<i64: 128, 256>}, {pipeline_mode = #tpu.pipeline_mode<synchronous>, transform_indices = @transform_11, window_bounds = array<i64: 1, 256>}, {pipeline_mode = #tpu.pipeline_mode<synchronous>, transform_indices = @transform_12, window_bounds = array<i64: 1, 8, 256>}, {pipeline_mode = #tpu.pipeline_mode<synchronous>, transform_indices = @transform_13, window_bounds = array<i64: 8, 128>}]} {
    %c0 = arith.constant 0 : index
    %c0_0 = arith.constant 0 : index
    %c0_1 = arith.constant 0 : index
    %0 = vector.load %arg1[%c0, %c0_0, %c0_1] : memref<1x8x128xf32, #tpu.memory_space<vmem>>, vector<1x8x128xf32>
    %1 = vector.shape_cast %0 : vector<1x8x128xf32> to vector<8x128xf32>
    %c0_2 = arith.constant 0 : index
    %c0_3 = arith.constant 0 : index
    %c0_4 = arith.constant 0 : index
    %2 = vector.load %arg2[%c0_2, %c0_3, %c0_4] : memref<1x8x128xf32, #tpu.memory_space<vmem>>, vector<1x8x128xf32>
    %3 = vector.shape_cast %2 : vector<1x8x128xf32> to vector<8x128xf32>
    %c0_5 = arith.constant 0 : index
    %c0_6 = arith.constant 0 : index
    %4 = vector.load %arg4[%c0_5, %c0_6] : memref<128x384xf32, #tpu.memory_space<vmem>>, vector<128x384xf32>
    %cst = arith.constant dense<0.000000e+00> : vector<8x384xf32>
    %5 = tpu.matmul %1, %4, %cst {dimension_numbers = #tpu.dot_dimension_numbers<[1], [0], [0], [1], [0, 0, 1, 1], [], []>} : vector<8x128xf32>, vector<128x384xf32>, vector<8x384xf32> -> vector<8x384xf32>
    %c0_7 = arith.constant 0 : index
    %c0_8 = arith.constant 0 : index
    %6 = vector.load %arg5[%c0_7, %c0_8] : memref<128x384xf32, #tpu.memory_space<vmem>>, vector<128x384xf32>
    %cst_9 = arith.constant dense<0.000000e+00> : vector<8x384xf32>
    %7 = tpu.matmul %3, %6, %cst_9 {dimension_numbers = #tpu.dot_dimension_numbers<[1], [0], [0], [1], [0, 0, 1, 1], [], []>} : vector<8x128xf32>, vector<128x384xf32>, vector<8x384xf32> -> vector<8x384xf32>
    %8 = arith.addf %5, %7 : vector<8x384xf32>
    %c0_10 = arith.constant 0 : index
    %c0_11 = arith.constant 0 : index
    %9 = vector.load %arg6[%c0_10, %c0_11] : memref<1x384xf32, #tpu.memory_space<vmem>>, vector<1x384xf32>
    %10 = vector.broadcast %9 : vector<1x384xf32> to vector<8x384xf32>
    %11 = arith.addf %8, %10 : vector<8x384xf32>
    %12 = vector.shape_cast %11 : vector<8x384xf32> to vector<1x8x384xf32>
    %c0_12 = arith.constant 0 : index
    %c0_13 = arith.constant 0 : index
    %c0_14 = arith.constant 0 : index
    %13 = vector.load %arg15[%c0_12, %c0_13, %c0_14] : memref<1x8x384xf32, #tpu.memory_space<vmem>>, vector<1x8x384xf32>
    tpu.vector_store %arg15[%c0_12, %c0_13, %c0_14], %12 {strides = array<i32>} : memref<1x8x384xf32, #tpu.memory_space<vmem>>, vector<1x8x384xf32>,
    %c0_15 = arith.constant 0 : index
    %c0_16 = arith.constant 0 : index
    %14 = vector.load %arg8[%c0_15, %c0_16] : memref<1x384xf32, #tpu.memory_space<vmem>>, vector<1x384xf32>
    %15 = vector.shape_cast %14 : vector<1x384xf32> to vector<1x384xf32>
    %16 = vector.broadcast %15 : vector<1x384xf32> to vector<8x384xf32>
    %c0_17 = arith.constant 0 : index
    %c0_18 = arith.constant 0 : index
    %17 = vector.load %arg3[%c0_17, %c0_18] : memref<8x128xf32, #tpu.memory_space<vmem>>, vector<8x128xf32>
    %c0_i32 = arith.constant 0 : i32
    %c0_19 = arith.constant 0 : index
    %c0_20 = arith.constant 0 : index
    %18 = vector.load %arg7[%c0_19, %c0_20] : memref<128x384xf32, #tpu.memory_space<vmem>>, vector<128x384xf32>
    %cst_21 = arith.constant dense<0.000000e+00> : vector<8x384xf32>
    %19 = tpu.matmul %17, %18, %cst_21 {dimension_numbers = #tpu.dot_dimension_numbers<[1], [0], [0], [1], [0, 0, 1, 1], [], []>} : vector<8x128xf32>, vector<128x384xf32>, vector<8x384xf32> -> vector<8x384xf32>
    %20 = arith.addf %19, %16 : vector<8x384xf32>
    %21 = arith.index_cast %c0_i32 : i32 to index
    %c0_22 = arith.constant 0 : index
    %c0_23 = arith.constant 0 : index
    %22 = vector.load %arg15[%21, %c0_22, %c0_23] : memref<1x8x384xf32, #tpu.memory_space<vmem>>, vector<1x8x384xf32>
    %23 = vector.shape_cast %22 : vector<1x8x384xf32> to vector<8x384xf32>
    %24 = vector.extract_strided_slice %23 {offsets = [0, 0], sizes = [8, 128], strides = [1, 1]} : vector<8x384xf32> to vector<8x128xf32>
    %25 = vector.extract_strided_slice %20 {offsets = [0, 0], sizes = [8, 128], strides = [1, 1]} : vector<8x384xf32> to vector<8x128xf32>
    %26 = arith.addf %24, %25 : vector<8x128xf32>
    %27 = arith.negf %26 : vector<8x128xf32>
    %28 = math.exp %27 : vector<8x128xf32>
    %cst_24 = arith.constant 1.000000e+00 : f32
    %29 = vector.broadcast %cst_24 : f32 to vector<8x128xf32>
    %30 = arith.addf %29, %28 : vector<8x128xf32>
    %31 = arith.divf %29, %30 : vector<8x128xf32>
    %32 = vector.extract_strided_slice %23 {offsets = [0, 128], sizes = [8, 128], strides = [1, 1]} : vector<8x384xf32> to vector<8x128xf32>
    %33 = vector.extract_strided_slice %20 {offsets = [0, 128], sizes = [8, 128], strides = [1, 1]} : vector<8x384xf32> to vector<8x128xf32>
    %34 = arith.addf %32, %33 : vector<8x128xf32>
    %35 = arith.negf %34 : vector<8x128xf32>
    %36 = math.exp %35 : vector<8x128xf32>
    %cst_25 = arith.constant 1.000000e+00 : f32
    %37 = vector.broadcast %cst_25 : f32 to vector<8x128xf32>
    %38 = arith.addf %37, %36 : vector<8x128xf32>
    %39 = arith.divf %37, %38 : vector<8x128xf32>
    %40 = vector.extract_strided_slice %23 {offsets = [0, 256], sizes = [8, 128], strides = [1, 1]} : vector<8x384xf32> to vector<8x128xf32>
    %41 = vector.extract_strided_slice %20 {offsets = [0, 256], sizes = [8, 128], strides = [1, 1]} : vector<8x384xf32> to vector<8x128xf32>
    %42 = arith.mulf %31, %41 : vector<8x128xf32>
    %43 = arith.addf %40, %42 : vector<8x128xf32>
    %44 = math.tanh %43 : vector<8x128xf32>
    %cst_26 = arith.constant 1.000000e+00 : f32
    %45 = vector.broadcast %cst_26 : f32 to vector<8x128xf32>
    %46 = arith.subf %45, %39 : vector<8x128xf32>
    %47 = arith.mulf %46, %44 : vector<8x128xf32>
    %48 = arith.mulf %39, %17 : vector<8x128xf32>
    %49 = arith.addf %47, %48 : vector<8x128xf32>
    %50 = arith.index_cast %c0_i32 : i32 to index
    %c0_27 = arith.constant 0 : index
    %c0_28 = arith.constant 0 : index
    %51 = vector.load %arg16[%50, %c0_27, %c0_28] : memref<1x8x128xf32, #tpu.memory_space<vmem>>, vector<1x8x128xf32>
    %52 = vector.shape_cast %51 : vector<1x8x128xf32> to vector<8x128xf32>
    %53 = vector.shape_cast %49 : vector<8x128xf32> to vector<1x8x128xf32>
    tpu.vector_store %arg16[%50, %c0_27, %c0_28], %53 {strides = array<i32>} : memref<1x8x128xf32, #tpu.memory_space<vmem>>, vector<1x8x128xf32>,
    %c1_i32 = arith.constant 1 : i32
    %c0_29 = arith.constant 0 : index
    %c0_30 = arith.constant 0 : index
    %54 = vector.load %arg14[%c0_29, %c0_30] : memref<8x128xf32, #tpu.memory_space<vmem>>, vector<8x128xf32>
    tpu.vector_store %arg14[%c0_29, %c0_30], %49 {strides = array<i32>} : memref<8x128xf32, #tpu.memory_space<vmem>>, vector<8x128xf32>,
    %c0_31 = arith.constant 0 : index
    %c0_32 = arith.constant 0 : index
    %c0_33 = arith.constant 0 : index
    %55 = vector.load %arg16[%c0_31, %c0_32, %c0_33] : memref<1x8x128xf32, #tpu.memory_space<vmem>>, vector<1x8x128xf32>
    %56 = vector.shape_cast %55 : vector<1x8x128xf32> to vector<8x128xf32>
    %c0_34 = arith.constant 0 : index
    %c0_35 = arith.constant 0 : index
    %c0_36 = arith.constant 0 : index
    %57 = vector.load %arg9[%c0_34, %c0_35, %c0_36] : memref<2x128x128xf32, #tpu.memory_space<vmem>>, vector<1x128x128xf32>
    %58 = vector.shape_cast %57 : vector<1x128x128xf32> to vector<128x128xf32>
    %cst_37 = arith.constant dense<0.000000e+00> : vector<8x128xf32>
    %59 = tpu.matmul %56, %58, %cst_37 {dimension_numbers = #tpu.dot_dimension_numbers<[1], [0], [0], [1], [0, 0, 1, 1], [], []>} : vector<8x128xf32>, vector<128x128xf32>, vector<8x128xf32> -> vector<8x128xf32>
    %c0_38 = arith.constant 0 : index
    %c0_39 = arith.constant 0 : index
    %c0_40 = arith.constant 0 : index
    %60 = vector.load %arg10[%c0_38, %c0_39, %c0_40] : memref<2x1x128xf32, #tpu.memory_space<vmem>>, vector<1x1x128xf32>
    %61 = vector.shape_cast %60 : vector<1x1x128xf32> to vector<1x128xf32>
    %62 = vector.broadcast %61 : vector<1x128xf32> to vector<8x128xf32>
    %63 = arith.addf %59, %62 : vector<8x128xf32>
    %cst_41 = arith.constant 0.000000e+00 : f32
    %64 = vector.broadcast %cst_41 : f32 to vector<8x128xf32>
    %65 = arith.maximumf %63, %64 : vector<8x128xf32>
    %c1 = arith.constant 1 : index
    %c0_42 = arith.constant 0 : index
    %c0_43 = arith.constant 0 : index
    %66 = vector.load %arg9[%c1, %c0_42, %c0_43] : memref<2x128x128xf32, #tpu.memory_space<vmem>>, vector<1x128x128xf32>
    %67 = vector.shape_cast %66 : vector<1x128x128xf32> to vector<128x128xf32>
    %cst_44 = arith.constant dense<0.000000e+00> : vector<8x128xf32>
    %68 = tpu.matmul %65, %67, %cst_44 {dimension_numbers = #tpu.dot_dimension_numbers<[1], [0], [0], [1], [0, 0, 1, 1], [], []>} : vector<8x128xf32>, vector<128x128xf32>, vector<8x128xf32> -> vector<8x128xf32>
    %c1_45 = arith.constant 1 : index
    %c0_46 = arith.constant 0 : index
    %c0_47 = arith.constant 0 : index
    %69 = vector.load %arg10[%c1_45, %c0_46, %c0_47] : memref<2x1x128xf32, #tpu.memory_space<vmem>>, vector<1x1x128xf32>
    %70 = vector.shape_cast %69 : vector<1x1x128xf32> to vector<1x128xf32>
    %71 = vector.broadcast %70 : vector<1x128xf32> to vector<8x128xf32>
    %72 = arith.addf %68, %71 : vector<8x128xf32>
    %cst_48 = arith.constant 0.000000e+00 : f32
    %73 = vector.broadcast %cst_48 : f32 to vector<8x128xf32>
    %74 = arith.maximumf %72, %73 : vector<8x128xf32>
    %c0_49 = arith.constant 0 : index
    %c0_50 = arith.constant 0 : index
    %75 = vector.load %arg11[%c0_49, %c0_50] : memref<128x256xf32, #tpu.memory_space<vmem>>, vector<128x256xf32>
    %cst_51 = arith.constant dense<0.000000e+00> : vector<8x256xf32>
    %76 = tpu.matmul %74, %75, %cst_51 {dimension_numbers = #tpu.dot_dimension_numbers<[1], [0], [0], [1], [0, 0, 1, 1], [], []>} : vector<8x128xf32>, vector<128x256xf32>, vector<8x256xf32> -> vector<8x256xf32>
    %c0_52 = arith.constant 0 : index
    %c0_53 = arith.constant 0 : index
    %77 = vector.load %arg12[%c0_52, %c0_53] : memref<1x256xf32, #tpu.memory_space<vmem>>, vector<1x256xf32>
    %78 = vector.broadcast %77 : vector<1x256xf32> to vector<8x256xf32>
    %79 = arith.addf %76, %78 : vector<8x256xf32>
    %80 = vector.shape_cast %79 : vector<8x256xf32> to vector<1x8x256xf32>
    %c0_54 = arith.constant 0 : index
    %c0_55 = arith.constant 0 : index
    %c0_56 = arith.constant 0 : index
    %81 = vector.load %arg13[%c0_54, %c0_55, %c0_56] : memref<1x8x256xf32, #tpu.memory_space<vmem>>, vector<1x8x256xf32>
    tpu.vector_store %arg13[%c0_54, %c0_55, %c0_56], %80 {strides = array<i32>} : memref<1x8x256xf32, #tpu.memory_space<vmem>>, vector<1x8x256xf32>,
    return
  }
  func.func @transform_0(%arg0: i32) -> (i32, i32, i32) {
    %c0_i32 = arith.constant 0 : i32
    %c0_i32_0 = arith.constant 0 : i32
    %c0_i32_1 = arith.constant 0 : i32
    %c0_i32_2 = arith.constant 0 : i32
    return %c0_i32, %c0_i32_0, %c0_i32_1 : i32, i32, i32
  }
  func.func @transform_1(%arg0: i32) -> (i32, i32, i32) {
    %c0_i32 = arith.constant 0 : i32
    %c0_i32_0 = arith.constant 0 : i32
    %c0_i32_1 = arith.constant 0 : i32
    %c0_i32_2 = arith.constant 0 : i32
    return %c0_i32, %c0_i32_0, %c0_i32_1 : i32, i32, i32
  }
  func.func @transform_2(%arg0: i32) -> (i32, i32) {
    %c0_i32 = arith.constant 0 : i32
    %c0_i32_0 = arith.constant 0 : i32
    %c0_i32_1 = arith.constant 0 : i32
    return %c0_i32, %c0_i32_0 : i32, i32
  }
  func.func @transform_3(%arg0: i32) -> (i32, i32) {
    %c0_i32 = arith.constant 0 : i32
    %c0_i32_0 = arith.constant 0 : i32
    %c0_i32_1 = arith.constant 0 : i32
    return %c0_i32, %c0_i32_0 : i32, i32
  }
  func.func @transform_4(%arg0: i32) -> (i32, i32) {
    %c0_i32 = arith.constant 0 : i32
    %c0_i32_0 = arith.constant 0 : i32
    %c0_i32_1 = arith.constant 0 : i32
    return %c0_i32, %c0_i32_0 : i32, i32
  }
  func.func @transform_5(%arg0: i32) -> (i32, i32) {
    %c0_i32 = arith.constant 0 : i32
    %c0_i32_0 = arith.constant 0 : i32
    %c0_i32_1 = arith.constant 0 : i32
    return %c0_i32, %c0_i32_0 : i32, i32
  }
  func.func @transform_6(%arg0: i32) -> (i32, i32) {
    %c0_i32 = arith.constant 0 : i32
    %c0_i32_0 = arith.constant 0 : i32
    %c0_i32_1 = arith.constant 0 : i32
    return %c0_i32, %c0_i32_0 : i32, i32
  }
  func.func @transform_7(%arg0: i32) -> (i32, i32) {
    %c0_i32 = arith.constant 0 : i32
    %c0_i32_0 = arith.constant 0 : i32
    %c0_i32_1 = arith.constant 0 : i32
    return %c0_i32, %c0_i32_0 : i32, i32
  }
  func.func @transform_8(%arg0: i32) -> (i32, i32, i32) {
    %c0_i32 = arith.constant 0 : i32
    %c0_i32_0 = arith.constant 0 : i32
    %c0_i32_1 = arith.constant 0 : i32
    %c0_i32_2 = arith.constant 0 : i32
    return %c0_i32, %c0_i32_0, %c0_i32_1 : i32, i32, i32
  }
  func.func @transform_9(%arg0: i32) -> (i32, i32, i32) {
    %c0_i32 = arith.constant 0 : i32
    %c0_i32_0 = arith.constant 0 : i32
    %c0_i32_1 = arith.constant 0 : i32
    %c0_i32_2 = arith.constant 0 : i32
    return %c0_i32, %c0_i32_0, %c0_i32_1 : i32, i32, i32
  }
  func.func @transform_10(%arg0: i32) -> (i32, i32) {
    %c0_i32 = arith.constant 0 : i32
    %c0_i32_0 = arith.constant 0 : i32
    %c0_i32_1 = arith.constant 0 : i32
    return %c0_i32, %c0_i32_0 : i32, i32
  }
  func.func @transform_11(%arg0: i32) -> (i32, i32) {
    %c0_i32 = arith.constant 0 : i32
    %c0_i32_0 = arith.constant 0 : i32
    %c0_i32_1 = arith.constant 0 : i32
    return %c0_i32, %c0_i32_0 : i32, i32
  }
  func.func @transform_12(%arg0: i32) -> (i32, i32, i32) {
    %c0_i32 = arith.constant 0 : i32
    %c0_i32_0 = arith.constant 0 : i32
    %c0_i32_1 = arith.constant 0 : i32
    %c0_i32_2 = arith.constant 0 : i32
    return %c0_i32, %c0_i32_0, %c0_i32_1 : i32, i32, i32
  }
  func.func @transform_13(%arg0: i32) -> (i32, i32) {
    %c0_i32 = arith.constant 0 : i32
    %c0_i32_0 = arith.constant 0 : i32
    %c0_i32_1 = arith.constant 0 : i32
    return %c0_i32, %c0_i32_0 : i32, i32
  }
}

</mosaic_0001>

<bundles_post_ra>
// kernel: _rollout.1
= control target key start
LH: loop header
LB: loop body
LE: loop exit
PB: predicated region body
PF: predicated region fallthrough
CT: control target
= control target key end

     0   :  { %19 = vsyncpa [#allocation5], 0  ;;  %s1712_s0 = inlined_call_operand.vmem [shape: f32[1,8,128], index: 0, kind: input, shape index: {}]   ;;  %s1713_s1 = inlined_call_operand.vmem [shape: f32[1,8,128], index: 1, kind: input, shape index: {}]   ;;  %s1714_s2 = inlined_call_operand.vmem [shape: f32[8,128], index: 2, kind: input, shape index: {}]   ;;  %s1715_s3 = inlined_call_operand.hbm [shape: f32[128,384], index: 3, kind: input, shape index: {}]   ;;  %s1716_s4 = inlined_call_operand.hbm [shape: f32[128,384], index: 4, kind: input, shape index: {}]   ;;  %s1717_s5 = inlined_call_operand.vmem [shape: f32[1,384], index: 5, kind: input, shape index: {}]   ;;  %s1718_s6 = inlined_call_operand.hbm [shape: f32[128,384], index: 6, kind: input, shape index: {}]   ;;  %s1719_s7 = inlined_call_operand.vmem [shape: f32[1,384], index: 7, kind: input, shape index: {}]   ;;  %s1720_s8 = inlined_call_operand.hbm [shape: f32[2,128,128], index: 8, kind: input, shape index: {}]   ;;  %s1721_s9 = inlined_call_operand.vmem [shape: f32[2,1,128], index: 9, kind: input, shape index: {}]   ;;  %s1722_s10 = inlined_call_operand.hbm [shape: f32[128,256], index: 10, kind: input, shape index: {}]   ;;  %s1723_s11 = inlined_call_operand.vmem [shape: f32[1,256], index: 11, kind: input, shape index: {}]   ;;  %s1724_s12 = inlined_call_operand.vmem [shape: f32[1,8,256], index: 12, kind: output, shape index: {0}]   ;;  %s1725_s13 = inlined_call_operand.vmem [shape: f32[8,128], index: 13, kind: output, shape index: {1}]  }
   0x1   :  { %20 = vsyncpa [#allocation7], 0 }
   0x2   :  { %21 = vsyncpa [#allocation10], 0  ;;  %s1460_s25 = smov [#allocation6]   ;;  %s1461_s27 = smov [#allocation9]  }
   0x3   :  { %s45_s26 = sshll.u32 %s1460_s25, 4  ;;  %s73_s28 = sshll.u32 %s1461_s27, 4  ;;  %s46_s26 = int_to_ptr.vmem [resolvable:$true] %s45_s26  ;;  %s74_s28 = int_to_ptr.vmem [resolvable:$true] %s73_s28 }
   0x4   :  { %s1362_s29 = scalar_lea.vmem %s46_s26, 6144  ;;  %p1367_p1 = scmp.lt.s32.totalorder %s46_s26, %s46_s26 }
   0x5   :  { %p1363_p0 = scmp.ne.s32.totalorder %s46_s26, %s1362_s29  ;;  %p1368_p2 = scmp.lt.s32.totalorder %s1362_s29, %s1362_s29 }
   0x7   :  { %p1369_p3 = por %p1368_p2, %p1367_p1 }
   0x9   :  { %p1370_p4 = pnand %p1369_p3, %p1363_p0 }
   0xb   :  { %1373 = shalt.err (!%p1370_p4)
}
   0xc   :  { %s1462_s30 = smov 384   ;;  %s1463_s14 = smov 24  }
   0xd   :  { %51 = dma.hbm_to_vmem [thread:$0]  %s1716_s4, 6144, %s46_s26, [#allocation7], %s1462_s30, %s1462_s30, %s1463_s14  }
   0xe   :  { %s1382_s17 = scalar_lea.vmem %s74_s28, 4096  ;;  %p1387_p6 = scmp.lt.s32.totalorder %s74_s28, %s74_s28 }
   0xf   :  { %p1383_p5 = scmp.ne.s32.totalorder %s74_s28, %s1382_s17  ;;  %p1388_p7 = scmp.lt.s32.totalorder %s1382_s17, %s1382_s17 }
  0x11   :  { %p1389_p8 = por %p1388_p7, %p1387_p6 }
  0x13   :  { %p1390_p9 = pnand %p1389_p8, %p1383_p5 }
  0x15   :  { %1393 = shalt.err (!%p1390_p9)
}
  0x16   :  { %s1464_s18 = smov 128   ;;  %s1465_s19 = smov 8  }
  0x17   :  { %79 = dma.hbm_to_vmem [thread:$0]  %s1720_s8, 4096, %s74_s28, [#allocation10], %s1464_s18, %s1464_s18, %s1465_s19  }
  0x18   :  { %s1466_s22 = smov [#allocation4]   ;;  %s1467_s24 = smov [#allocation8]  }
  0x19   :  { %s33_s23 = sshll.u32 %s1466_s22, 4  ;;  %s59_s25 = sshll.u32 %s1467_s24, 4  ;;  %s34_s23 = int_to_ptr.vmem [resolvable:$true] %s33_s23  ;;  %s60_s25 = int_to_ptr.vmem [resolvable:$true] %s59_s25 }
  0x1a   :  { %s1402_s4 = scalar_lea.vmem %s34_s23, 6144  ;;  %p1407_p11 = scmp.lt.s32.totalorder %s34_s23, %s34_s23 }
  0x1b   :  { %p1403_p10 = scmp.ne.s32.totalorder %s34_s23, %s1402_s4  ;;  %p1408_p12 = scmp.lt.s32.totalorder %s1402_s4, %s1402_s4 }
  0x1d   :  { %p1409_p13 = por %p1408_p12, %p1407_p11 }
  0x1f   :  { %p1410_p0 = pnand %p1409_p13, %p1403_p10 }
  0x21   :  { %1413 = shalt.err (!%p1410_p0)
}
  0x22   :  { %39 = dma.hbm_to_vmem [thread:$0]  %s1715_s3, 6144, %s34_s23, [#allocation5], %s1462_s30, %s1462_s30, %s1463_s14  }
  0x23   :  { %s1422_s8 = scalar_lea.vmem %s60_s25, 6144  ;;  %p1427_p2 = scmp.lt.s32.totalorder %s60_s25, %s60_s25 }
  0x24   :  { %p1423_p1 = scmp.ne.s32.totalorder %s60_s25, %s1422_s8  ;;  %p1428_p3 = scmp.lt.s32.totalorder %s1422_s8, %s1422_s8 }
  0x26   :  { %p1429_p4 = por %p1428_p3, %p1427_p2 }
  0x28   :  { %p1430_p5 = pnand %p1429_p4, %p1423_p1 }
  0x2a   :  { %1433 = shalt.err (!%p1430_p5)
}
  0x2b   :  { %65 = dma.hbm_to_vmem [thread:$0]  %s1718_s6, 6144, %s60_s25, [#allocation7], %s1462_s30, %s1462_s30, %s1463_s14  }
  0x2c   :  { %s1468_s15 = smov [#allocation11]  }
  0x2d   :  { %s87_s16 = sshll.u32 %s1468_s15, 4  ;;  %s88_s16 = int_to_ptr.vmem [resolvable:$true] %s87_s16 }
  0x2e   :  { %s1442_s17 = scalar_lea.vmem %s88_s16, 4096  ;;  %p1447_p7 = scmp.lt.s32.totalorder %s88_s16, %s88_s16 }
  0x2f   :  { %p1443_p6 = scmp.ne.s32.totalorder %s88_s16, %s1442_s17  ;;  %p1448_p8 = scmp.lt.s32.totalorder %s1442_s17, %s1442_s17 }
  0x31   :  { %p1449_p9 = por %p1448_p8, %p1447_p7 }
  0x33   :  { %p1450_p10 = pnand %p1449_p9, %p1443_p6 }
  0x35   :  { %1453 = shalt.err (!%p1450_p10)
}
  0x36   :  { %s1469_s3 = smov 256   ;;  %s1470_s18 = smov 16  }
  0x37   :  { %93 = dma.hbm_to_vmem [thread:$0]  %s1722_s10, 4096, %s88_s16, [#allocation10], %s1469_s3, %s1469_s3, %s1470_s18  }
  0x38   :  { %1454 = dma.done.wait [#allocation5], 6144  }
  0x39   :  { %1455 = vsyncadd [#allocation5], 4294961152 }
  0x3a   :  { %1456 = dma.done.wait [#allocation7], 12288  }
  0x3b   :  { %1457 = vsyncadd [#allocation7], 4294955008 }
  0x3c   :  { %1458 = dma.done.wait [#allocation10], 8192  }
  0x3d   :  { %1459 = vsyncadd [#allocation10], 4294959104  ;;  %v1471_v0 = vmov 0.0   ;;  %vm1472_vm0 = vmmov 0   ;;  %v207_v1 = vld [vmem:[#allocation6 + $0x170] sm:$0xff]  ;;  %v206_v2 = vld [vmem:[#allocation6 + $0x168] sm:$0xff] }
  0x3e   :  { %1156 = vmatprep.subr.mxu1 %v1471_v0  ;;  %273 = vmatprep.mubr.f32.mxu0 %v1471_v0  ;;  %v204_v3 = vld [vmem:[#allocation6 + $0x158] sm:$0xff]  ;;  %v203_v4 = vld [vmem:[#allocation6 + $0x150] sm:$0xff]  ;;  %v201_v6 = vld [vmem:[#allocation6 + $0x140] sm:$0xff] }
  0x3f   :  { %1188 = vmatprep.mubr.msk.f32.mxu1 %vm1472_vm0, %v1471_v0  ;;  %209 = vmatprep.subr.mxu0 %v207_v1  ;;  %v208_v5 = vld [vmem:[#allocation6 + $0x178] sm:$0xff]  ;;  %v205_v7 = vld [vmem:[#allocation6 + $0x160] sm:$0xff]  ;;  %v202_v9 = vld [vmem:[#allocation6 + $0x148] sm:$0xff] }
  0x40   :  { %210 = vmatpush1.msra.mxu0 %v206_v2  ;;  %1157 = vmatpush3.msra.mxu1 %v208_v5  ;;  %v200_v8 = vld [vmem:[#allocation6 + $0x138] sm:$0xff]  ;;  %v198_v10 = vld [vmem:[#allocation6 + $0x128] sm:$0xff]  ;;  %v197_v11 = vld [vmem:[#allocation6 + $0x120] sm:$0xff] }
  0x41   :  { %211 = vmatprep.subr.mxu0 %v204_v3  ;;  %1158 = vmatprep.subr.mxu1 %v1471_v0  ;;  %v199_v12 = vld [vmem:[#allocation6 + $0x130] sm:$0xff]  ;;  %v194_v14 = vld [vmem:[#allocation6 + $0x108] sm:$0xff]  ;;  %v196_v15 = vld [vmem:[#allocation6 + $0x118] sm:$0xff] }
  0x42   :  { %212 = vmatpush1.msra.mxu0 %v203_v4  ;;  %1159 = vmatpush3.msra.mxu1 %v205_v7  ;;  %v195_v13 = vld [vmem:[#allocation6 + $0x110] sm:$0xff]  ;;  %v192_v16 = vld [vmem:[#allocation6 + $0xf8] sm:$0xff]  ;;  %v193_v18 = vld [vmem:[#allocation6 + $0x100] sm:$0xff] }
  0x43   :  { %213 = vmatprep.subr.mxu0 %v201_v6  ;;  %1160 = vmatprep.subr.mxu1 %v1471_v0  ;;  %v191_v17 = vld [vmem:[#allocation6 + $0xf0] sm:$0xff]  ;;  %v189_v19 = vld [vmem:[#allocation6 + $0xe0] sm:$0xff]  ;;  %v188_v20 = vld [vmem:[#allocation6 + $0xd8] sm:$0xff] }
  0x44   :  { %214 = vmatpush1.msra.mxu0 %v200_v8  ;;  %1161 = vmatpush3.msra.mxu1 %v202_v9  ;;  %v190_v21 = vld [vmem:[#allocation6 + $0xe8] sm:$0xff]  ;;  %v185_v23 = vld [vmem:[#allocation6 + $0xc0] sm:$0xff]  ;;  %v187_v24 = vld [vmem:[#allocation6 + $0xd0] sm:$0xff] }
  0x45   :  { %215 = vmatprep.subr.mxu0 %v198_v10  ;;  %1162 = vmatprep.subr.mxu1 %v1471_v0  ;;  %v186_v22 = vld [vmem:[#allocation6 + $0xc8] sm:$0xff]  ;;  %v183_v25 = vld [vmem:[#allocation6 + $0xb0] sm:$0xff]  ;;  %v184_v27 = vld [vmem:[#allocation6 + $0xb8] sm:$0xff] }
  0x46   :  { %216 = vmatpush1.msra.mxu0 %v197_v11  ;;  %1163 = vmatpush3.msra.mxu1 %v199_v12  ;;  %v182_v26 = vld [vmem:[#allocation6 + $0xa8] sm:$0xff]  ;;  %v180_v28 = vld [vmem:[#allocation6 + $0x98] sm:$0xff]  ;;  %v179_v29 = vld [vmem:[#allocation6 + $0x90] sm:$0xff] }
  0x47   :  { %217 = vmatprep.subr.mxu0 %v195_v13  ;;  %1164 = vmatprep.subr.mxu1 %v1471_v0  ;;  %v181_v30 = vld [vmem:[#allocation6 + $0xa0] sm:$0xff]  ;;  %v176_v32 = vld [vmem:[#allocation6 + $0x78] sm:$0xff]  ;;  %v178_v33 = vld [vmem:[#allocation6 + $0x88] sm:$0xff] }
  0x48   :  { %218 = vmatpush1.msra.mxu0 %v194_v14  ;;  %1165 = vmatpush3.msra.mxu1 %v196_v15  ;;  %v177_v31 = vld [vmem:[#allocation6 + $0x80] sm:$0xff]  ;;  %v174_v34 = vld [vmem:[#allocation6 + $0x68] sm:$0xff]  ;;  %v175_v36 = vld [vmem:[#allocation6 + $0x70] sm:$0xff] }
  0x49   :  { %219 = vmatprep.subr.mxu0 %v192_v16  ;;  %1166 = vmatprep.subr.mxu1 %v1471_v0  ;;  %v173_v35 = vld [vmem:[#allocation6 + $0x60] sm:$0xff]  ;;  %v171_v37 = vld [vmem:[#allocation6 + $0x50] sm:$0xff]  ;;  %v170_v38 = vld [vmem:[#allocation6 + $0x48] sm:$0xff] }
  0x4a   :  { %220 = vmatpush1.msra.mxu0 %v191_v17  ;;  %1167 = vmatpush3.msra.mxu1 %v193_v18  ;;  %v172_v39 = vld [vmem:[#allocation6 + $0x58] sm:$0xff]  ;;  %v167_v41 = vld [vmem:[#allocation6 + $0x30] sm:$0xff]  ;;  %v169_v42 = vld [vmem:[#allocation6 + $0x40] sm:$0xff] }
  0x4b   :  { %221 = vmatprep.subr.mxu0 %v189_v19  ;;  %1168 = vmatprep.subr.mxu1 %v1471_v0  ;;  %v168_v40 = vld [vmem:[#allocation6 + $0x38] sm:$0xff]  ;;  %v165_v43 = vld [vmem:[#allocation6 + $0x20] sm:$0xff]  ;;  %v166_v45 = vld [vmem:[#allocation6 + $0x28] sm:$0xff] }
  0x4c   :  { %222 = vmatpush1.msra.mxu0 %v188_v20  ;;  %1169 = vmatpush3.msra.mxu1 %v190_v21  ;;  %v164_v44 = vld [vmem:[#allocation6 + $0x18] sm:$0xff]  ;;  %v162_v46 = vld [vmem:[#allocation6 + $0x8] sm:$0xff]  ;;  %v161_v47 = vld [vmem:[#allocation6] sm:$0xff] }
  0x4d   :  { %223 = vmatprep.subr.mxu0 %v186_v22  ;;  %1170 = vmatprep.subr.mxu1 %v1471_v0  ;;  %v163_v48 = vld [vmem:[#allocation6 + $0x10] sm:$0xff]  ;;  %v112_v49 = vld [vmem:[%s1713_s1] sm:$0xff]  ;;  %v158_v51 = vld [vmem:[#allocation4 + $0x168] sm:$0xff] }
  0x4e   :  { %224 = vmatpush1.msra.mxu0 %v185_v23  ;;  %1171 = vmatpush3.msra.mxu1 %v187_v24  ;;  %v159_v50 = vld [vmem:[#allocation4 + $0x170] sm:$0xff]  ;;  %v156_v52 = vld [vmem:[#allocation4 + $0x158] sm:$0xff]  ;;  %v153_v55 = vld [vmem:[#allocation4 + $0x140] sm:$0xff] }
  0x4f   :  { %225 = vmatprep.subr.mxu0 %v183_v25  ;;  %1172 = vmatprep.subr.mxu1 %v1471_v0  ;;  %v155_v53 = vld [vmem:[#allocation4 + $0x150] sm:$0xff]  ;;  %v160_v54 = vld [vmem:[#allocation4 + $0x178] sm:$0xff]  ;;  %v157_v57 = vld [vmem:[#allocation4 + $0x160] sm:$0xff] }
  0x50   :  { %226 = vmatpush1.msra.mxu0 %v182_v26  ;;  %1173 = vmatpush3.msra.mxu1 %v184_v27  ;;  %v152_v56 = vld [vmem:[#allocation4 + $0x138] sm:$0xff]  ;;  %v150_v58 = vld [vmem:[#allocation4 + $0x128] sm:$0xff]  ;;  %v149_v59 = vld [vmem:[#allocation4 + $0x120] sm:$0xff] }
  0x51   :  { %227 = vmatprep.subr.mxu0 %v180_v28  ;;  %1174 = vmatprep.subr.mxu1 %v1471_v0  ;;  %v154_v60 = vld [vmem:[#allocation4 + $0x148] sm:$0xff]  ;;  %v147_v61 = vld [vmem:[#allocation4 + $0x110] sm:$0xff]  ;;  %v144_v1 = vld [vmem:[#allocation4 + $0xf8] sm:$0xff] }
  0x52   :  { %228 = vmatpush1.msra.mxu0 %v179_v29  ;;  %1175 = vmatpush3.msra.mxu1 %v181_v30  ;;  %v146_v62 = vld [vmem:[#allocation4 + $0x108] sm:$0xff]  ;;  %v151_v63 = vld [vmem:[#allocation4 + $0x130] sm:$0xff]  ;;  %v148_v3 = vld [vmem:[#allocation4 + $0x118] sm:$0xff] }
  0x53   :  { %229 = vmatprep.subr.mxu0 %v177_v31  ;;  %1176 = vmatprep.subr.mxu1 %v1471_v0  ;;  %v143_v2 = vld [vmem:[#allocation4 + $0xf0] sm:$0xff]  ;;  %v141_v4 = vld [vmem:[#allocation4 + $0xe0] sm:$0xff]  ;;  %v140_v5 = vld [vmem:[#allocation4 + $0xd8] sm:$0xff] }
  0x54   :  { %230 = vmatpush1.msra.mxu0 %v176_v32  ;;  %1177 = vmatpush3.msra.mxu1 %v178_v33  ;;  %v145_v6 = vld [vmem:[#allocation4 + $0x100] sm:$0xff]  ;;  %v138_v7 = vld [vmem:[#allocation4 + $0xc8] sm:$0xff]  ;;  %v135_v10 = vld [vmem:[#allocation4 + $0xb0] sm:$0xff] }
  0x55   :  { %231 = vmatprep.subr.mxu0 %v174_v34  ;;  %1178 = vmatprep.subr.mxu1 %v1471_v0  ;;  %v137_v8 = vld [vmem:[#allocation4 + $0xc0] sm:$0xff]  ;;  %v142_v9 = vld [vmem:[#allocation4 + $0xe8] sm:$0xff]  ;;  %v139_v12 = vld [vmem:[#allocation4 + $0xd0] sm:$0xff] }
  0x56   :  { %232 = vmatpush1.msra.mxu0 %v173_v35  ;;  %1179 = vmatpush3.msra.mxu1 %v175_v36  ;;  %v134_v11 = vld [vmem:[#allocation4 + $0xa8] sm:$0xff]  ;;  %v132_v13 = vld [vmem:[#allocation4 + $0x98] sm:$0xff]  ;;  %v131_v14 = vld [vmem:[#allocation4 + $0x90] sm:$0xff] }
  0x57   :  { %233 = vmatprep.subr.mxu0 %v171_v37  ;;  %1180 = vmatprep.subr.mxu1 %v1471_v0  ;;  %v136_v15 = vld [vmem:[#allocation4 + $0xb8] sm:$0xff]  ;;  %v129_v16 = vld [vmem:[#allocation4 + $0x80] sm:$0xff]  ;;  %v126_v19 = vld [vmem:[#allocation4 + $0x68] sm:$0xff] }
  0x58   :  { %234 = vmatpush1.msra.mxu0 %v170_v38  ;;  %1181 = vmatpush3.msra.mxu1 %v172_v39  ;;  %v128_v17 = vld [vmem:[#allocation4 + $0x78] sm:$0xff]  ;;  %v133_v18 = vld [vmem:[#allocation4 + $0xa0] sm:$0xff]  ;;  %v130_v21 = vld [vmem:[#allocation4 + $0x88] sm:$0xff] }
  0x59   :  { %235 = vmatprep.subr.mxu0 %v168_v40  ;;  %1182 = vmatprep.subr.mxu1 %v1471_v0  ;;  %v125_v20 = vld [vmem:[#allocation4 + $0x60] sm:$0xff]  ;;  %v123_v22 = vld [vmem:[#allocation4 + $0x50] sm:$0xff]  ;;  %v122_v23 = vld [vmem:[#allocation4 + $0x48] sm:$0xff] }
  0x5a   :  { %236 = vmatpush1.msra.mxu0 %v167_v41  ;;  %1183 = vmatpush3.msra.mxu1 %v169_v42  ;;  %v127_v24 = vld [vmem:[#allocation4 + $0x70] sm:$0xff]  ;;  %v120_v25 = vld [vmem:[#allocation4 + $0x38] sm:$0xff]  ;;  %v117_v28 = vld [vmem:[#allocation4 + $0x20] sm:$0xff] }
  0x5b   :  { %237 = vmatprep.subr.mxu0 %v165_v43  ;;  %1184 = vmatprep.subr.mxu1 %v1471_v0  ;;  %v119_v26 = vld [vmem:[#allocation4 + $0x30] sm:$0xff]  ;;  %v124_v27 = vld [vmem:[#allocation4 + $0x58] sm:$0xff]  ;;  %v121_v30 = vld [vmem:[#allocation4 + $0x40] sm:$0xff] }
  0x5c   :  { %238 = vmatpush1.msra.mxu0 %v164_v44  ;;  %1185 = vmatpush3.msra.mxu1 %v166_v45  ;;  %v116_v29 = vld [vmem:[#allocation4 + $0x18] sm:$0xff]  ;;  %v114_v31 = vld [vmem:[#allocation4 + $0x8] sm:$0xff]  ;;  %v113_v32 = vld [vmem:[#allocation4] sm:$0xff] }
  0x5d   :  { %239 = vmatprep.subr.mxu0 %v162_v46  ;;  %1186 = vmatprep.subr.mxu1 %v1471_v0  ;;  %v111_v33 = vld [vmem:[%s1712_s0] sm:$0xff]  ;;  %v118_v34 = vld [vmem:[#allocation4 + $0x28] sm:$0xff]  ;;  %v578_v35 = vld [vmem:[#allocation8 + $0x170] sm:$0xff] }
  0x5e   :  { %240 = vmatpush1.msra.mxu0 %v161_v47  ;;  %1187 = vmatpush3.msra.mxu1 %v163_v48  ;;  %v577_v36 = vld [vmem:[#allocation8 + $0x168] sm:$0xff]  ;;  %v115_v37 = vld [vmem:[#allocation4 + $0x10] sm:$0xff]  ;;  %v575_v38 = vld [vmem:[#allocation8 + $0x158] sm:$0xff] }
  0x5f   :  { %274 = vmatmul.mubr.f32.vlgmr.msra.gmra.mxu0 %v112_v49  ;;  %350 = vmatprep.subr.mxu0 %v159_v50  ;;  %v574_v39 = vld [vmem:[#allocation8 + $0x150] sm:$0xff]  ;;  %v572_v40 = vld [vmem:[#allocation8 + $0x140] sm:$0xff]  ;;  %v571_v41 = vld [vmem:[#allocation8 + $0x138] sm:$0xff] }
  0x60   :  { %351 = vmatpush1.msra.mxu0 %v158_v51  ;;  %1191 = vmatprep.subr.mxu1 %v1471_v0  ;;  %v569_v42 = vld [vmem:[#allocation8 + $0x128] sm:$0xff]  ;;  %v579_v43 = vld [vmem:[#allocation8 + $0x178] sm:$0xff]  ;;  %v568_v44 = vld [vmem:[#allocation8 + $0x120] sm:$0xff] }
  0x61   :  { %352 = vmatprep.subr.mxu0 %v156_v52  ;;  %1189 = vmatmul.mubr.f32.vlgmr.msra.gmra.mxu1 %v112_v49  ;;  %v566_v45 = vld [vmem:[#allocation8 + $0x110] sm:$0xff]  ;;  %v576_v46 = vld [vmem:[#allocation8 + $0x160] sm:$0xff]  ;;  %v565_v47 = vld [vmem:[#allocation8 + $0x108] sm:$0xff] }
  0x62   :  { %353 = vmatpush1.msra.mxu0 %v155_v53  ;;  %1192 = vmatpush3.msra.mxu1 %v160_v54  ;;  %v563_v48 = vld [vmem:[#allocation8 + $0xf8] sm:$0xff]  ;;  %v573_v49 = vld [vmem:[#allocation8 + $0x148] sm:$0xff]  ;;  %v562_v50 = vld [vmem:[#allocation8 + $0xf0] sm:$0xff] }
  0x63   :  { %354 = vmatprep.subr.mxu0 %v153_v55  ;;  %1193 = vmatprep.subr.mxu1 %v1471_v0  ;;  %v560_v51 = vld [vmem:[#allocation8 + $0xe0] sm:$0xff]  ;;  %v570_v52 = vld [vmem:[#allocation8 + $0x130] sm:$0xff]  ;;  %v559_v53 = vld [vmem:[#allocation8 + $0xd8] sm:$0xff] }
  0x64   :  { %355 = vmatpush1.msra.mxu0 %v152_v56  ;;  %1194 = vmatpush3.msra.mxu1 %v157_v57  ;;  %v557_v54 = vld [vmem:[#allocation8 + $0xc8] sm:$0xff]  ;;  %v567_v55 = vld [vmem:[#allocation8 + $0x118] sm:$0xff]  ;;  %v556_v56 = vld [vmem:[#allocation8 + $0xc0] sm:$0xff] }
  0x65   :  { %356 = vmatprep.subr.mxu0 %v150_v58  ;;  %1195 = vmatprep.subr.mxu1 %v1471_v0  ;;  %v554_v57 = vld [vmem:[#allocation8 + $0xb0] sm:$0xff]  ;;  %v564_v58 = vld [vmem:[#allocation8 + $0x100] sm:$0xff] }
  0x66   :  { %357 = vmatpush1.msra.mxu0 %v149_v59  ;;  %1196 = vmatpush3.msra.mxu1 %v154_v60  ;;  %v553_v59 = vld [vmem:[#allocation8 + $0xa8] sm:$0xff]  ;;  %v551_v60 = vld [vmem:[#allocation8 + $0x98] sm:$0xff] }
  0x67   :  { %358 = vmatprep.subr.mxu0 %v147_v61  ;;  %1197 = vmatprep.subr.mxu1 %v1471_v0  ;;  %v561_v61 = vld [vmem:[#allocation8 + $0xe8] sm:$0xff] }
  0x68   :  { %359 = vmatpush1.msra.mxu0 %v146_v62  ;;  %1198 = vmatpush3.msra.mxu1 %v151_v63  ;;  %v550_v62 = vld [vmem:[#allocation8 + $0x90] sm:$0xff]  ;;  %v548_v63 = vld [vmem:[#allocation8 + $0x80] sm:$0xff] }
  0x69   :  { %360 = vmatprep.subr.mxu0 %v144_v1  ;;  %1199 = vmatprep.subr.mxu1 %v1471_v0  ;;  %v558_v1 = vld [vmem:[#allocation8 + $0xd0] sm:$0xff] }
  0x6a   :  { %361 = vmatpush1.msra.mxu0 %v143_v2  ;;  %1200 = vmatpush3.msra.mxu1 %v148_v3  ;;  %v547_v2 = vld [vmem:[#allocation8 + $0x78] sm:$0xff]  ;;  %v545_v3 = vld [vmem:[#allocation8 + $0x68] sm:$0xff] }
  0x6b   :  { %362 = vmatprep.subr.mxu0 %v141_v4  ;;  %1201 = vmatprep.subr.mxu1 %v1471_v0  ;;  %v555_v4 = vld [vmem:[#allocation8 + $0xb8] sm:$0xff] }
  0x6c   :  { %363 = vmatpush1.msra.mxu0 %v140_v5  ;;  %1202 = vmatpush3.msra.mxu1 %v145_v6  ;;  %v544_v5 = vld [vmem:[#allocation8 + $0x60] sm:$0xff]  ;;  %v542_v6 = vld [vmem:[#allocation8 + $0x50] sm:$0xff] }
  0x6d   :  { %364 = vmatprep.subr.mxu0 %v138_v7  ;;  %1203 = vmatprep.subr.mxu1 %v1471_v0  ;;  %v552_v7 = vld [vmem:[#allocation8 + $0xa0] sm:$0xff] }
  0x6e   :  { %365 = vmatpush1.msra.mxu0 %v137_v8  ;;  %1204 = vmatpush3.msra.mxu1 %v142_v9  ;;  %v541_v8 = vld [vmem:[#allocation8 + $0x48] sm:$0xff]  ;;  %v539_v9 = vld [vmem:[#allocation8 + $0x38] sm:$0xff] }
  0x6f   :  { %366 = vmatprep.subr.mxu0 %v135_v10  ;;  %1205 = vmatprep.subr.mxu1 %v1471_v0  ;;  %v549_v10 = vld [vmem:[#allocation8 + $0x88] sm:$0xff] }
  0x70   :  { %367 = vmatpush1.msra.mxu0 %v134_v11  ;;  %1206 = vmatpush3.msra.mxu1 %v139_v12  ;;  %v538_v11 = vld [vmem:[#allocation8 + $0x30] sm:$0xff]  ;;  %v536_v12 = vld [vmem:[#allocation8 + $0x20] sm:$0xff] }
  0x71   :  { %368 = vmatprep.subr.mxu0 %v132_v13  ;;  %1207 = vmatprep.subr.mxu1 %v1471_v0  ;;  %v546_v13 = vld [vmem:[#allocation8 + $0x70] sm:$0xff] }
  0x72   :  { %369 = vmatpush1.msra.mxu0 %v131_v14  ;;  %1208 = vmatpush3.msra.mxu1 %v136_v15  ;;  %v535_v14 = vld [vmem:[#allocation8 + $0x18] sm:$0xff]  ;;  %v533_v15 = vld [vmem:[#allocation8 + $0x8] sm:$0xff] }
  0x73   :  { %370 = vmatprep.subr.mxu0 %v129_v16  ;;  %1209 = vmatprep.subr.mxu1 %v1471_v0  ;;  %v543_v16 = vld [vmem:[#allocation8 + $0x58] sm:$0xff] }
  0x74   :  { %371 = vmatpush1.msra.mxu0 %v128_v17  ;;  %1210 = vmatpush3.msra.mxu1 %v133_v18  ;;  %v532_v17 = vld [vmem:[#allocation8] sm:$0xff] }
  0x75   :  { %372 = vmatprep.subr.mxu0 %v126_v19  ;;  %1211 = vmatprep.subr.mxu1 %v1471_v0  ;;  %v1627_v18 = vld [vmem:[%s1714_s2] sm:$0xff] }
  0x76   :  { %373 = vmatpush1.msra.mxu0 %v125_v20  ;;  %1212 = vmatpush3.msra.mxu1 %v130_v21  ;;  %v540_v19 = vld [vmem:[#allocation8 + $0x40] sm:$0xff]  ;;  %v537_v20 = vld [vmem:[#allocation8 + $0x28] sm:$0xff]  ;;  %v534_v21 = vld [vmem:[#allocation8 + $0x10] sm:$0xff] }
  0x77   :  { %374 = vmatprep.subr.mxu0 %v123_v22  ;;  %1213 = vmatprep.subr.mxu1 %v1471_v0  ;;  %v763_v22 = vld [vmem:[#allocation9 + $0x78] sm:$0xff] }
  0x78   :  { %375 = vmatpush1.msra.mxu0 %v122_v23  ;;  %1214 = vmatpush3.msra.mxu1 %v127_v24  ;;  %v762_v23 = vld [vmem:[#allocation9 + $0x70] sm:$0xff]  ;;  %v761_v24 = vld [vmem:[#allocation9 + $0x68] sm:$0xff] }
  0x79   :  { %376 = vmatprep.subr.mxu0 %v120_v25  ;;  %1215 = vmatprep.subr.mxu1 %v1471_v0  ;;  %v760_v25 = vld [vmem:[#allocation9 + $0x60] sm:$0xff] }
  0x7a   :  { %377 = vmatpush1.msra.mxu0 %v119_v26  ;;  %1216 = vmatpush3.msra.mxu1 %v124_v27  ;;  %v759_v26 = vld [vmem:[#allocation9 + $0x58] sm:$0xff]  ;;  %v758_v27 = vld [vmem:[#allocation9 + $0x50] sm:$0xff] }
  0x7b   :  { %378 = vmatprep.subr.mxu0 %v117_v28  ;;  %1217 = vmatprep.subr.mxu1 %v1471_v0  ;;  %v757_v28 = vld [vmem:[#allocation9 + $0x48] sm:$0xff] }
  0x7c   :  { %379 = vmatpush1.msra.mxu0 %v116_v29  ;;  %1218 = vmatpush3.msra.mxu1 %v121_v30  ;;  %v756_v29 = vld [vmem:[#allocation9 + $0x40] sm:$0xff]  ;;  %v755_v30 = vld [vmem:[#allocation9 + $0x38] sm:$0xff] }
  0x7d   :  { %380 = vmatprep.subr.mxu0 %v114_v31  ;;  %414 = vmatprep.mubr.f32.mxu0 %v1471_v0  ;;  %v754_v31 = vld [vmem:[#allocation9 + $0x30] sm:$0xff] }
  0x7e   :  { %381 = vmatpush1.msra.mxu0 %v113_v32  ;;  %1219 = vmatprep.subr.mxu1 %v1471_v0  ;;  %v753_v32 = vld [vmem:[#allocation9 + $0x28] sm:$0xff] }
  0x7f   :  { %415 = vmatmul.mubr.f32.vlgmr.msra.gmra.mxu0 %v111_v33  ;;  %1220 = vmatpush3.msra.mxu1 %v118_v34  ;;  %v751_v34 = vld [vmem:[#allocation9 + $0x18] sm:$0xff] }
  0x80   :  { %580 = vmatprep.subr.mxu0 %v578_v35  ;;  %1221 = vmatprep.subr.mxu1 %v1471_v0  ;;  %v750_v35 = vld [vmem:[#allocation9 + $0x10] sm:$0xff] }
  0x81   :  { %581 = vmatpush1.msra.mxu0 %v577_v36  ;;  %1222 = vmatpush3.msra.mxu1 %v115_v37  ;;  %v749_v36 = vld [vmem:[#allocation9 + $0x8] sm:$0xff]  ;;  %v748_v37 = vld [vmem:[#allocation9] sm:$0xff] }
  0x82   :  { %1223 = vmatprep.mubr.msk.f32.mxu1 %vm1472_vm0, %v1471_v0  ;;  %582 = vmatprep.subr.mxu0 %v575_v38  ;;  %v858_v38 = vld [vmem:[#allocation9 + $0xf8] sm:$0xff] }
  0x83   :  { %1224 = vmatmul.mubr.f32.vlgmr.msra.gmra.mxu1 %v111_v33  ;;  %583 = vmatpush1.msra.mxu0 %v574_v39  ;;  %v752_v33 = vld [vmem:[#allocation9 + $0x20] sm:$0xff]  ;;  %v857_v39 = vld [vmem:[#allocation9 + $0xf0] sm:$0xff] }
  0x84   :  { %584 = vmatprep.subr.mxu0 %v572_v40  ;;  %644 = vmatprep.mubr.f32.mxu0 %v1471_v0  ;;  %v856_v40 = vld [vmem:[#allocation9 + $0xe8] sm:$0xff] }
  0x85   :  { %585 = vmatpush1.msra.mxu0 %v571_v41  ;;  %1226 = vmatprep.subr.mxu1 %v1471_v0  ;;  %v855_v41 = vld [vmem:[#allocation9 + $0xe0] sm:$0xff] }
  0x86   :  { %586 = vmatprep.subr.mxu0 %v569_v42  ;;  %1227 = vmatpush3.msra.mxu1 %v579_v43  ;;  %v854_v43 = vld [vmem:[#allocation9 + $0xd8] sm:$0xff] }
  0x87   :  { %587 = vmatpush1.msra.mxu0 %v568_v44  ;;  %1228 = vmatprep.subr.mxu1 %v1471_v0 }
  0x88   :  { %588 = vmatprep.subr.mxu0 %v566_v45  ;;  %1229 = vmatpush3.msra.mxu1 %v576_v46  ;;  %v853_v45 = vld [vmem:[#allocation9 + $0xd0] sm:$0xff]  ;;  %v852_v46 = vld [vmem:[#allocation9 + $0xc8] sm:$0xff] }
  0x89   :  { %589 = vmatpush1.msra.mxu0 %v565_v47  ;;  %1230 = vmatprep.subr.mxu1 %v1471_v0  ;;  %v851_v47 = vld [vmem:[#allocation9 + $0xc0] sm:$0xff] }
  0x8a   :  { %590 = vmatprep.subr.mxu0 %v563_v48  ;;  %1231 = vmatpush3.msra.mxu1 %v573_v49  ;;  %v850_v48 = vld [vmem:[#allocation9 + $0xb8] sm:$0xff]  ;;  %v849_v49 = vld [vmem:[#allocation9 + $0xb0] sm:$0xff] }
  0x8b   :  { %591 = vmatpush1.msra.mxu0 %v562_v50  ;;  %1232 = vmatprep.subr.mxu1 %v1471_v0  ;;  %v848_v50 = vld [vmem:[#allocation9 + $0xa8] sm:$0xff] }
  0x8c   :  { %592 = vmatprep.subr.mxu0 %v560_v51  ;;  %1233 = vmatpush3.msra.mxu1 %v570_v52  ;;  %v847_v51 = vld [vmem:[#allocation9 + $0xa0] sm:$0xff]  ;;  %v846_v52 = vld [vmem:[#allocation9 + $0x98] sm:$0xff] }
  0x8d   :  { %593 = vmatpush1.msra.mxu0 %v559_v53  ;;  %1234 = vmatprep.subr.mxu1 %v1471_v0 }
  0x8e   :  { %594 = vmatprep.subr.mxu0 %v557_v54  ;;  %1235 = vmatpush3.msra.mxu1 %v567_v55  ;;  %v493_v55 = vlaneseq }
  0x8f   :  { %595 = vmatpush1.msra.mxu0 %v556_v56  ;;  %1236 = vmatprep.subr.mxu1 %v1471_v0 }
  0x90   :  { %596 = vmatprep.subr.mxu0 %v554_v57  ;;  %1237 = vmatpush3.msra.mxu1 %v564_v58  ;;  %v494_v57 = vshrl.u32 %v493_v55, 7  ;;  %v955_v55 = vld [vmem:[#allocation11 + $0x88] sm:$0xff] }
  0x91   :  { %597 = vmatpush1.msra.mxu0 %v553_v59  ;;  %1238 = vmatprep.subr.mxu1 %v1471_v0 }
  0x92   :  { %598 = vmatprep.subr.mxu0 %v551_v60  ;;  %1239 = vmatpush3.msra.mxu1 %v561_v61  ;;  %v1673_v59 = vsub.s32 0, %v494_v57  ;;  %v491_v61 = vld [vmem:[%s1717_s5] sm:$0x7] }
  0x93   :  { %599 = vmatpush1.msra.mxu0 %v550_v62  ;;  %1240 = vmatprep.subr.mxu1 %v1471_v0  ;;  %v514_v62 = vld [vmem:[%s1719_s7] sm:$0x7] }
  0x94   :  { %600 = vmatprep.subr.mxu0 %v548_v63  ;;  %1241 = vmatpush3.msra.mxu1 %v558_v1  ;;  %v496_v1 = vrot.slane %v491_v61, %v1673_v59 }
  0x95   :  { %601 = vmatpush1.msra.mxu0 %v547_v2  ;;  %1242 = vmatprep.subr.mxu1 %v1471_v0  ;;  %v519_v2 = vrot.slane %v514_v62, %v1673_v59 }
  0x96   :  { %602 = vmatprep.subr.mxu0 %v545_v3  ;;  %1243 = vmatpush3.msra.mxu1 %v555_v4  ;;  %v1683_v4 = vsub.s32 1, %v494_v57 }
  0x97   :  { %603 = vmatpush1.msra.mxu0 %v544_v5  ;;  %1244 = vmatprep.subr.mxu1 %v1471_v0 }
  0x98   :  { %604 = vmatprep.subr.mxu0 %v542_v6  ;;  %1245 = vmatpush3.msra.mxu1 %v552_v7 }
  0x99   :  { %605 = vmatpush1.msra.mxu0 %v541_v8  ;;  %1246 = vmatprep.subr.mxu1 %v1471_v0  ;;  %v523_v8 = vrot.slane %v514_v62, %v1683_v4 }
  0x9a   :  { %606 = vmatprep.subr.mxu0 %v539_v9  ;;  %1247 = vmatpush3.msra.mxu1 %v549_v10 }
  0x9b   :  { %607 = vmatpush1.msra.mxu0 %v538_v11  ;;  %1248 = vmatprep.subr.mxu1 %v1471_v0  ;;  %v500_v11 = vrot.slane %v491_v61, %v1683_v4 }
  0x9c   :  { %608 = vmatprep.subr.mxu0 %v536_v12  ;;  %1249 = vmatpush3.msra.mxu1 %v546_v13 }
  0x9d   :  { %609 = vmatpush1.msra.mxu0 %v535_v14  ;;  %1250 = vmatprep.subr.mxu1 %v1471_v0 }
  0x9e   :  { %610 = vmatprep.subr.mxu0 %v533_v15  ;;  %1251 = vmatpush3.msra.mxu1 %v543_v16 }
  0x9f   :  { %611 = vmatpush1.msra.mxu0 %v532_v17  ;;  %1252 = vmatprep.subr.mxu1 %v1471_v0 }
  0xa0   :  { %645 = vmatmul.mubr.f32.vlgmr.msra.gmra.mxu0 %v1627_v18  ;;  %1253 = vmatpush3.msra.mxu1 %v540_v19 }
  0xa1   :  { %1254 = vmatprep.subr.mxu1 %v1471_v0  ;;  %1258 = vmatprep.mubr.msk.f32.mxu1 %vm1472_vm0, %v1471_v0 }
  0xa2   :  { %1255 = vmatpush3.msra.mxu1 %v537_v20  ;;  %1261 = vmatprep.subr.mxu0 %v1471_v0 }
  0xa3   :  { %1256 = vmatprep.subr.mxu1 %v1471_v0  ;;  %1293 = vmatprep.mubr.msk.f32.mxu0 %vm1472_vm0, %v1471_v0 }
  0xa4   :  { %1257 = vmatpush3.msra.mxu1 %v534_v21  ;;  %1262 = vmatpush3.msra.mxu0 %v763_v22 }
  0xa5   :  { %1259 = vmatmul.mubr.f32.vlgmr.msra.gmra.mxu1 %v1627_v18  ;;  %1296 = vmatprep.subr.mxu1 %v1471_v0 }
  0xa6   :  { %1328 = vmatprep.mubr.msk.f32.mxu1 %vm1472_vm0, %v1471_v0  ;;  %1263 = vmatprep.subr.mxu0 %v1471_v0 }
  0xa7   :  { %1264 = vmatpush3.msra.mxu0 %v762_v23  ;;  %1297 = vmatpush3.msra.mxu1 %v858_v38  ;;  %v503_v23 = vsub.s32 2, %v494_v57  ;;  %v953_v57 = vld [vmem:[#allocation11 + $0x78] sm:$0xff] }
  0xa8   :  { %1265 = vmatprep.subr.mxu0 %v1471_v0  ;;  %1298 = vmatprep.subr.mxu1 %v1471_v0 }
  0xa9   :  { %1266 = vmatpush3.msra.mxu0 %v761_v24  ;;  %1299 = vmatpush3.msra.mxu1 %v857_v39  ;;  %v527_v24 = vrot.slane %v514_v62, %v503_v23  ;;  %v949_v62 = vld [vmem:[#allocation11 + $0x58] sm:$0xff] }
  0xaa   :  { %1267 = vmatprep.subr.mxu0 %v1471_v0  ;;  %1300 = vmatprep.subr.mxu1 %v1471_v0 }
  0xab   :  { %1268 = vmatpush3.msra.mxu0 %v760_v25  ;;  %1301 = vmatpush3.msra.mxu1 %v856_v40  ;;  %v845_v40 = vld [vmem:[#allocation9 + $0x90] sm:$0xff] }
  0xac   :  { %1269 = vmatprep.subr.mxu0 %v1471_v0  ;;  %1302 = vmatprep.subr.mxu1 %v1471_v0 }
  0xad   :  { %1270 = vmatpush3.msra.mxu0 %v759_v26  ;;  %1303 = vmatpush3.msra.mxu1 %v855_v41  ;;  %v844_v41 = vld [vmem:[#allocation9 + $0x88] sm:$0xff] }
  0xae   :  { %1271 = vmatprep.subr.mxu0 %v1471_v0  ;;  %1304 = vmatprep.subr.mxu1 %v1471_v0 }
  0xaf   :  { %1272 = vmatpush3.msra.mxu0 %v758_v27  ;;  %1305 = vmatpush3.msra.mxu1 %v854_v43  ;;  %v504_v27 = vrot.slane %v491_v61, %v503_v23  ;;  %v969_v43 = vld [vmem:[#allocation11 + $0xf8] sm:$0xff]  ;;  %v950_v61 = vld [vmem:[#allocation11 + $0x60] sm:$0xff] }
  0xb0   :  { %1273 = vmatprep.subr.mxu0 %v1471_v0  ;;  %1306 = vmatprep.subr.mxu1 %v1471_v0  ;;  %v970_v23 = vld [vmem:[%s1723_s11] sm:$0x3] }
  0xb1   :  { %1274 = vmatpush3.msra.mxu0 %v757_v28  ;;  %1307 = vmatpush3.msra.mxu1 %v853_v45  ;;  %v966_v45 = vld [vmem:[#allocation11 + $0xe0] sm:$0xff] }
  0xb2   :  { %1275 = vmatprep.subr.mxu0 %v1471_v0  ;;  %1308 = vmatprep.subr.mxu1 %v1471_v0 }
  0xb3   :  { %1276 = vmatpush3.msra.mxu0 %v756_v29  ;;  %1309 = vmatpush3.msra.mxu1 %v852_v46  ;;  %v965_v46 = vld [vmem:[#allocation11 + $0xd8] sm:$0xff] }
  0xb4   :  { %1277 = vmatprep.subr.mxu0 %v1471_v0  ;;  %1310 = vmatprep.subr.mxu1 %v1471_v0 }
  0xb5   :  { %1278 = vmatpush3.msra.mxu0 %v755_v30  ;;  %1311 = vmatpush3.msra.mxu1 %v851_v47  ;;  %v964_v47 = vld [vmem:[#allocation11 + $0xd0] sm:$0xff] }
  0xb6   :  { %1279 = vmatprep.subr.mxu0 %v1471_v0  ;;  %1312 = vmatprep.subr.mxu1 %v1471_v0 }
  0xb7   :  { %1280 = vmatpush3.msra.mxu0 %v754_v31  ;;  %1313 = vmatpush3.msra.mxu1 %v850_v48  ;;  %v963_v48 = vld [vmem:[#allocation11 + $0xc8] sm:$0xff] }
  0xb8   :  { %1281 = vmatprep.subr.mxu0 %v1471_v0  ;;  %1314 = vmatprep.subr.mxu1 %v1471_v0 }
  0xb9   :  { %1282 = vmatpush3.msra.mxu0 %v753_v32  ;;  %1315 = vmatpush3.msra.mxu1 %v849_v49  ;;  %v962_v49 = vld [vmem:[#allocation11 + $0xc0] sm:$0xff] }
  0xba   :  { %1283 = vmatprep.subr.mxu0 %v1471_v0  ;;  %1316 = vmatprep.subr.mxu1 %v1471_v0 }
  0xbb   :  { %1284 = vmatpush3.msra.mxu0 %v752_v33  ;;  %1317 = vmatpush3.msra.mxu1 %v848_v50  ;;  %v961_v50 = vld [vmem:[#allocation11 + $0xb8] sm:$0xff] }
  0xbc   :  { %1285 = vmatprep.subr.mxu0 %v1471_v0  ;;  %1318 = vmatprep.subr.mxu1 %v1471_v0 }
  0xbd   :  { %1286 = vmatpush3.msra.mxu0 %v751_v34  ;;  %1319 = vmatpush3.msra.mxu1 %v847_v51  ;;  %v960_v51 = vld [vmem:[#allocation11 + $0xb0] sm:$0xff] }
  0xbe   :  { %1287 = vmatprep.subr.mxu0 %v1471_v0  ;;  %1320 = vmatprep.subr.mxu1 %v1471_v0 }
  0xbf   :  { %1288 = vmatpush3.msra.mxu0 %v750_v35  ;;  %1321 = vmatpush3.msra.mxu1 %v846_v52  ;;  %v958_v52 = vld [vmem:[#allocation11 + $0xa0] sm:$0xff] }
  0xc0   :  { %1289 = vmatprep.subr.mxu0 %v1471_v0  ;;  %1322 = vmatprep.subr.mxu1 %v1471_v0 }
  0xc1   :  { %1290 = vmatpush3.msra.mxu0 %v749_v36  ;;  %1323 = vmatpush3.msra.mxu1 %v845_v40 }
  0xc2   :  { %1291 = vmatprep.subr.mxu0 %v1471_v0  ;;  %1324 = vmatprep.subr.mxu1 %v1471_v0 }
  0xc3   :  { %1292 = vmatpush3.msra.mxu0 %v748_v37  ;;  %1325 = vmatpush3.msra.mxu1 %v844_v41 }
  0xc4   :  { %1326 = vmatprep.subr.mxu1 %v1471_v0  ;;  %982 = vmatprep.subr.mxu0 %v969_v43 }
 0x11f   :  { %v275_v56 = vpop.f32.mrf.mxu0 }
 0x121   :  { %v1660_v42 = vpop.f32.mrf.mxu1  ;;  %v277_v58 = vpop.f32.mrf.mxu0 }
 0x123   :  { %v1190_v44 = vpop.f32.mrf.mxu1 }
 0x124   :  { %v967_v44 = vld [vmem:[#allocation11 + $0xe8] sm:$0xff] }
 0x13f   :  { %v416_v60 = vpop.f32.mrf.mxu0 }
 0x140   :  { %v417_v63 = vadd.f32 %v416_v60, %v275_v56  ;;  %v954_v56 = vld [vmem:[#allocation11 + $0x80] sm:$0xff]  ;;  %v951_v60 = vld [vmem:[#allocation11 + $0x68] sm:$0xff] }
 0x141   :  { %v418_v3 = vpop.f32.mrf.mxu0 }
 0x142   :  { %v508_v6 = vadd.f32 %v496_v1, %v417_v63  ;;  %v419_v10 = vadd.f32 %v418_v3, %v277_v58  ;;  %v952_v58 = vld [vmem:[#allocation11 + $0x70] sm:$0xff]  ;;  %v947_v1 = vld [vmem:[#allocation11 + $0x48] sm:$0xff]  ;;  %v945_v3 = vld [vmem:[#allocation11 + $0x38] sm:$0xff] }
 0x143   :  { %v487_v53 = vpop.f32.mrf.mxu1  ;;  %v948_v63 = vld [vmem:[#allocation11 + $0x50] sm:$0xff] }
 0x144   :  { %v509_v16 = vadd.f32 %v500_v11, %v419_v10  ;;  %v488_v26 = vadd.f32 %v487_v53, %v1660_v42  ;;  %v843_v42 = vld [vmem:[#allocation9 + $0x80] sm:$0xff]  ;;  %v957_v53 = vld [vmem:[#allocation11 + $0x98] sm:$0xff] }
 0x145   :  { %v1225_v54 = vpop.f32.mrf.mxu1  ;;  %1327 = vmatpush3.msra.mxu1 %v843_v42 }
 0x146   :  { %v510_v31 = vadd.f32 %v504_v27, %v488_v26  ;;  %v956_v54 = vld [vmem:[#allocation11 + $0x90] sm:$0xff] }
 0x160   :  { %v646_v5 = vpop.f32.mrf.mxu0 }
 0x161   :  { %v647_v7 = vadd.f32 %v646_v5, %v519_v2  ;;  %v946_v2 = vld [vmem:[#allocation11 + $0x40] sm:$0xff]  ;;  %v944_v5 = vld [vmem:[#allocation11 + $0x30] sm:$0xff] }
 0x162   :  { %v648_v9 = vpop.f32.mrf.mxu0 }
 0x163   :  { %v724_v12 = vadd.f32 %v647_v7, %v508_v6  ;;  %v649_v14 = vadd.f32 %v648_v9, %v523_v8  ;;  %v943_v6 = vld [vmem:[#allocation11 + $0x28] sm:$0xff]  ;;  %v1068_v7 = vld [vmem:[%s1721_s9] ss:$0 sm:$0xff] }
 0x165   :  { %v1066_v13 = vmul.f32 -1.442695, %v724_v12  ;;  %v717_v15 = vpop.f32.mrf.mxu1  ;;  %v731_v19 = vadd.f32 %v649_v14, %v509_v16  ;;  %v942_v12 = vld [vmem:[#allocation11 + $0x20] sm:$0xff]  ;;  %v940_v14 = vld [vmem:[#allocation11 + $0x10] sm:$0xff] }
 0x166   :  { %v718_v29 = vadd.f32 %v717_v15, %v527_v24  ;;  %v939_v15 = vld [vmem:[#allocation11 + $0x8] sm:$0xff]  ;;  %v938_v16 = vld [vmem:[#allocation11] sm:$0xff]  ;;  %v975_v24 = vrot.slane %v970_v23, %v1673_v59 }
 0x167   :  { %1344 = vpow2.f32 %v1066_v13  ;;  %v1260_v17 = vpop.f32.mrf.mxu1  ;;  %v1067_v20 = vmul.f32 -1.442695, %v731_v19  ;;  %v941_v13 = vld [vmem:[#allocation11 + $0x18] sm:$0xff] }
 0x168   :  { %v1070_v17 = vld [vmem:[%s1721_s9 + $0x1] ss:$0 sm:$0xff] }
 0x169   :  { %1346 = vpow2.f32 %v1067_v20 }
 0x174   :  { %v1345_v21 = vpop.eup %1344 }
 0x175   :  { %v728_v22 = vadd.f32 1.0, %v1345_v21 }
 0x176   :  { %v1347_v25 = vpop.eup %1346 }
 0x177   :  { %1348 = vrcp.f32 %v728_v22  ;;  %v735_v28 = vadd.f32 1.0, %v1347_v25  ;;  %v979_v25 = vrot.slane %v970_v23, %v1683_v4 }
 0x179   :  { %1350 = vrcp.f32 %v735_v28 }
 0x184   :  { %v1349_v30 = vpop.eup %1348 }
 0x185   :  { %v738_v32 = vmul.f32 %v1349_v30, %v718_v29 }
 0x186   :  { %v1351_v34 = vpop.eup %1350 }
 0x187   :  { %v739_v33 = vadd.f32 %v738_v32, %v510_v31  ;;  %v741_v35 = vsub.f32 1.0, %v1351_v34  ;;  %v743_v38 = vmul.f32 %v1351_v34, %v1627_v18  ;;  %v968_v18 = vld [vmem:[#allocation11 + $0xf0] sm:$0xff] }
 0x189   :  { %1352 = vtanh.f32 %v739_v33 }
 0x196   :  { %v1353_v36 = vpop.eup %1352 }
 0x197   :  { %v742_v37 = vmul.f32 %v1353_v36, %v741_v35 }
 0x199   :  { %v744_v39 = vadd.f32 %v743_v38, %v742_v37 }
 0x19b   :  { %746 = vst [vmem:[%s1725_s13] sm:$0xff] %v744_v39  ;;  %1294 = vmatmul.mubr.f32.vlgmr.msra.gmra.mxu0 %v744_v39 }
 0x19c   :  { %1046 = vmatprep.mubr.f32.mxu0 %v1471_v0  ;;  %983 = vmatpush1.msra.mxu0 %v968_v18  ;;  %v959_v0 = vld [vmem:[#allocation11 + $0xa8] sm:$0xff] }
 0x19d   :  { %984 = vmatprep.subr.mxu0 %v967_v44 }
 0x19e   :  { %985 = vmatpush1.msra.mxu0 %v966_v45 }
 0x19f   :  { %986 = vmatprep.subr.mxu0 %v965_v46 }
 0x1a0   :  { %987 = vmatpush1.msra.mxu0 %v964_v47 }
 0x1a1   :  { %988 = vmatprep.subr.mxu0 %v963_v48 }
 0x1a2   :  { %989 = vmatpush1.msra.mxu0 %v962_v49 }
 0x1a3   :  { %990 = vmatprep.subr.mxu0 %v961_v50 }
 0x1a4   :  { %991 = vmatpush1.msra.mxu0 %v960_v51 }
 0x1a5   :  { %992 = vmatprep.subr.mxu0 %v959_v0 }
 0x1a6   :  { %993 = vmatpush1.msra.mxu0 %v958_v52 }
 0x1a7   :  { %994 = vmatprep.subr.mxu0 %v957_v53 }
 0x1a8   :  { %995 = vmatpush1.msra.mxu0 %v956_v54 }
 0x1a9   :  { %996 = vmatprep.subr.mxu0 %v955_v55 }
 0x1aa   :  { %997 = vmatpush1.msra.mxu0 %v954_v56 }
 0x1ab   :  { %998 = vmatprep.subr.mxu0 %v953_v57 }
 0x1ac   :  { %999 = vmatpush1.msra.mxu0 %v952_v58 }
 0x1ad   :  { %1000 = vmatprep.subr.mxu0 %v951_v60 }
 0x1ae   :  { %1001 = vmatpush1.msra.mxu0 %v950_v61 }
 0x1af   :  { %1002 = vmatprep.subr.mxu0 %v949_v62 }
 0x1b0   :  { %1003 = vmatpush1.msra.mxu0 %v948_v63 }
 0x1b1   :  { %1004 = vmatprep.subr.mxu0 %v947_v1 }
 0x1b2   :  { %1005 = vmatpush1.msra.mxu0 %v946_v2 }
 0x1b3   :  { %1006 = vmatprep.subr.mxu0 %v945_v3 }
 0x1b4   :  { %1007 = vmatpush1.msra.mxu0 %v944_v5 }
 0x1b5   :  { %1008 = vmatprep.subr.mxu0 %v943_v6 }
 0x1b6   :  { %1009 = vmatpush1.msra.mxu0 %v942_v12 }
 0x1b7   :  { %1010 = vmatprep.subr.mxu0 %v941_v13 }
 0x1b8   :  { %1011 = vmatpush1.msra.mxu0 %v940_v14 }
 0x1b9   :  { %1012 = vmatprep.subr.mxu0 %v939_v15 }
 0x1ba   :  { %1013 = vmatpush1.msra.mxu0 %v938_v16 }
 0x25b   :  { %v837_v8 = vpop.f32.mrf.mxu0 }
 0x25c   :  { %v838_v9 = vadd.f32 %v1068_v7, %v837_v8 }
 0x25d   :  { %v1295_v10 = vpop.f32.mrf.mxu0 }
 0x25e   :  { %v841_v11 = vmax.f32 %v838_v9, 0.0 }
 0x260   :  { %1329 = vmatmul.mubr.f32.vlgmr.msra.gmra.mxu1 %v841_v11 }
 0x320   :  { %v933_v19 = vpop.f32.mrf.mxu1 }
 0x321   :  { %v934_v20 = vadd.f32 %v1070_v17, %v933_v19 }
 0x322   :  { %v1330_v21 = vpop.f32.mrf.mxu1 }
 0x323   :  { %v937_v22 = vmax.f32 %v934_v20, 0.0 }
 0x325   :  { %1047 = vmatmul.mubr.f32.vlgmr.msra.gmra.mxu0 %v937_v22 }
 0x3e5   :  { %v1048_v26 = vpop.f32.mrf.mxu0 }
 0x3e6   :  { %v1049_v27 = vadd.f32 %v1048_v26, %v975_v24 }
 0x3e7   :  { %v1050_v28 = vpop.f32.mrf.mxu0 }
 0x3e8   :  { %1053 = vst [vmem:[%s1724_s12] sm:$0xff] %v1049_v27  ;;  %v1051_v29 = vadd.f32 %v1050_v28, %v979_v25 }
 0x3ea   :  { %1054 = vst [vmem:[%s1724_s12 + $0x8] sm:$0xff] %v1051_v29 }
 0x3eb   :  { %1063 = vsyncpa [#allocation5], 1 }
 0x3ec   :  { %1064 = vsyncpa [#allocation7], 1 }
 0x3ed   :  { %1065 = vsyncpa [#allocation10], 1 }

</bundles_post_ra>
